<compile_context>
chip_gen: v5e
topology: v5e:2x2
jax: 0.10.0
libtpu: 0.0.40
codegen_flags: <defaults>
</compile_context>

<pallas_src>
import math

import jax
import jax.numpy as jnp
from jax import lax
from jax.experimental import pallas as pl
from jax.experimental.pallas import tpu as pltpu


def _round_up(x: int, m: int) -> int:
    return ((x + m - 1) // m) * m


def _make_kernel(R, tile_r, tiles_per_split, num_splits, inv_n):
    """Kernel factory; all arguments are static Python values closed over."""
    row_mask_needed = (R % tile_r) != 0

    def kernel(pred_ref, target_ref, out_ref, acc_ref):
        if num_splits > 1:
            s = pl.program_id(0)          # core split (CORE_PARALLEL on v7x)
            i = pl.program_id(1)          # row-tile reduction axis
            last = pl.num_programs(1) - 1
        else:
            s = None
            i = pl.program_id(0)          # row-tile reduction axis
            last = pl.num_programs(0) - 1

        @pl.when(i == 0)
        def _init():
            acc_ref[...] = jnp.zeros_like(acc_ref)

        # Upcast in-kernel (inputs may be bf16); clamp, diff, square.
        p = jnp.clip(pred_ref[...].astype(jnp.float32), -10.0, 10.0)
        t = jnp.clip(target_ref[...].astype(jnp.float32), -10.0, 10.0)
        d = p - t
        dd = d * d

        if row_mask_needed:
            # Last row tile extends past the array: out-of-bounds rows contain
            # undefined data -> mask them to zero before accumulating.
            if num_splits > 1:
                tile_idx = s * tiles_per_split + i
            else:
                tile_idx = i
            row0 = tile_idx * tile_r
            rid = lax.broadcasted_iota(jnp.int32, dd.shape, 0)
            dd = jnp.where((row0 + rid) < R, dd, 0.0)

        # Pure VALU full-tile accumulation (no per-step cross-lane reduce,
        # no per-step scalar SMEM round trip).
        acc_ref[...] += dd

        @pl.when(i == last)
        def _finalize():
            # Single cross-lane/sublane reduce + mean fold, once per split.
            out_ref[0, 0] = jnp.sum(acc_ref[...]) * jnp.float32(inv_n)

    return kernel


def cardinality_loss(pred: jax.Array, target: jax.Array, alpha: float = 0.9) -> jax.Array:
    """Pallas implementation of CardinalityLoss.forward.

    alpha is unused in the PyTorch forward pass; kept for signature parity.
    """
    assert pred.shape == target.shape, (pred.shape, target.shape)
    n = pred.size
    assert n > 0, "empty input"

    # ---- 2-D view of the inputs (no padding, no data copy for >=2-D inputs).
    if pred.ndim >= 2:
        C = pred.shape[-1]
        R = n // C
    else:
        # 1-D / scalar: pick a lane-dense split if one divides n, else one row.
        C = next((l for l in (512, 256, 128) if n >= l and n % l == 0), n)
        R = n // C
    p2d = pred.reshape(R, C)
    t2d = target.reshape(R, C)

    itemsize = p2d.dtype.itemsize
    row_align = 8 if itemsize >= 4 else (16 if itemsize == 2 else 32)

    # ---- Row-tile size: ~1M elements (~4 MiB f32-equivalent) per input block.
    TARGET_BLOCK_ELEMS = 1 << 20
    tile_r = max(row_align, (TARGET_BLOCK_ELEMS // max(C, 1)) // row_align * row_align)
    if tile_r >= R:
        tile_r = R  # single full-height tile (allowed even if not 8-aligned)
    num_row_tiles = -(-R // tile_r)
    # TODO(synk): column-tile extremely wide last dims (row_align*C blocks that
    # exceed the VMEM budget) instead of a single full-width block.

    # ---- Only split across TensorCores on multi-TC chips (v7x); on v5e/v6e the
    # grid is a serial loop on one TC and an extra axis is pure overhead.
    device_kind = jax.devices()[0].device_kind.lower()
    multi_tc = "v7" in device_kind
    if multi_tc and num_row_tiles >= 2 and num_row_tiles % 2 == 0:
        num_splits = 2
    else:
        num_splits = 1
    tiles_per_split = num_row_tiles // num_splits

    kernel = _make_kernel(R, tile_r, tiles_per_split, num_splits, 1.0 / n)

    if num_splits > 1:
        grid = (num_splits, tiles_per_split)
        in_spec = pl.BlockSpec((tile_r, C),
                               lambda s, i: (s * tiles_per_split + i, 0))
        out_spec = pl.BlockSpec((1, 1), lambda s, i: (s, 0),
                                memory_space=pltpu.MemorySpace.SMEM)
        dim_sem = (pltpu.CORE_PARALLEL, pltpu.ARBITRARY)
    else:
        grid = (num_row_tiles,)
        in_spec = pl.BlockSpec((tile_r, C), lambda i: (i, 0))
        out_spec = pl.BlockSpec((1, 1), lambda i: (0, 0),
                                memory_space=pltpu.MemorySpace.SMEM)
        dim_sem = (pltpu.ARBITRARY,)

    # ---- Scoped-VMEM budget from the actual (lane/sublane padded) block sizes:
    # 2 inputs x 2 double-buffers + f32 accumulator + slack.
    c_pad = _round_up(C, 128)
    blk_in_bytes = _round_up(tile_r, row_align) * c_pad * itemsize
    acc_bytes = _round_up(tile_r, 8) * c_pad * 4
    need = 4 * blk_in_bytes + acc_bytes + (2 << 20)
    vmem_limit = int(min(max(need * 5 // 4, 32 << 20), 100 << 20))

    cost = pl.CostEstimate(
        flops=7 * n,                                  # 2 clamps, sub, mul, add, ...
        transcendentals=0,
        bytes_accessed=2 * n * itemsize + 4 * num_splits,
    )

    partial = pl.pallas_call(
        kernel,
        out_shape=jax.ShapeDtypeStruct((num_splits, 1), jnp.float32),
        grid_spec=pltpu.PrefetchScalarGridSpec(
            num_scalar_prefetch=0,
            grid=grid,
            in_specs=[in_spec, in_spec],
            out_specs=out_spec,
            scratch_shapes=[pltpu.VMEM((tile_r, C), jnp.float32)],
        ),
        compiler_params=pltpu.CompilerParams(
            dimension_semantics=dim_sem,
            vmem_limit_bytes=vmem_limit,
        ),
        cost_estimate=cost,
    )(p2d, t2d)

    if num_splits == 1:
        return partial[0, 0]          # mean already folded in-kernel
    return jnp.sum(partial)           # cross-core combine (per-split means sum to mean)


if __name__ == "__main__":
    key = jax.random.PRNGKey(0)
    k1, k2, k3, k4, k5, k6 = jax.random.split(key, 6)

    # 1) Small aligned shape (batch=8, feat=128); inject out-of-range values
    #    to exercise the clamp.
    pred1 = jax.random.normal(k1, (8, 128), jnp.float32) * 6.0
    targ1 = jax.random.normal(k2, (8, 128), jnp.float32) * 6.0
    pred1 = pred1.at[0, 0].set(25.0)
    targ1 = targ1.at[0, 1].set(-30.0)
    out1 = jax.block_until_ready(cardinality_loss(pred1, targ1))
    ref1 = jnp.mean((jnp.clip(pred1, -10.0, 10.0) - jnp.clip(targ1, -10.0, 10.0)) ** 2)
    assert jnp.allclose(out1, ref1, rtol=1e-5, atol=1e-6), (out1, ref1)

    # 2) Misaligned multi-tile shape: partial last row tile -> in-kernel masking,
    #    no wrapper-side padding.
    pred2 = jax.random.normal(k3, (4100, 257), jnp.float32) * 8.0
    targ2 = jax.random.normal(k4, (4100, 257), jnp.float32) * 8.0
    out2 = jax.block_until_ready(cardinality_loss(pred2, targ2))
    ref2 = jnp.mean((jnp.clip(pred2, -10.0, 10.0) - jnp.clip(targ2, -10.0, 10.0)) ** 2)
    assert jnp.allclose(out2, ref2, rtol=1e-4, atol=1e-5), (out2, ref2)

    # 3) bf16 inputs: native-dtype streaming with in-kernel f32 upcast.
    pred3 = (jax.random.normal(k5, (130, 384), jnp.float32) * 7.0).astype(jnp.bfloat16)
    targ3 = (jax.random.normal(k6, (130, 384), jnp.float32) * 7.0).astype(jnp.bfloat16)
    out3 = jax.block_until_ready(cardinality_loss(pred3, targ3))
    p3 = jnp.clip(pred3.astype(jnp.float32), -10.0, 10.0)
    t3 = jnp.clip(targ3.astype(jnp.float32), -10.0, 10.0)
    ref3 = jnp.mean((p3 - t3) ** 2)
    assert jnp.allclose(out3, ref3, rtol=1e-4, atol=1e-5), (out3, ref3)

    # 4) 1-D input (non-128-multiple length): single-row path, no padding.
    k7, k8 = jax.random.split(k6)
    pred4 = jax.random.normal(k7, (1000,), jnp.float32) * 6.0
    targ4 = jax.random.normal(k8, (1000,), jnp.float32) * 6.0
    out4 = jax.block_until_ready(cardinality_loss(pred4, targ4))
    ref4 = jnp.mean((jnp.clip(pred4, -10.0, 10.0) - jnp.clip(targ4, -10.0, 10.0)) ** 2)
    assert jnp.allclose(out4, ref4, rtol=1e-5, atol=1e-6), (out4, ref4)

    print("KERNEL_OK")
</pallas_src>

<mosaic_0001>
module attributes {stable_mosaic.version = 11 : i64} {
  func.func @kernel(%arg0: i32, %arg1: memref<8x128xf32, #tpu.memory_space<vmem>>, %arg2: memref<8x128xf32, #tpu.memory_space<vmem>>, %arg3: memref<1x1xf32, #tpu.memory_space<smem>>, %arg4: memref<8x128xf32, #tpu.memory_space<vmem>>) attributes {dimension_semantics = [#tpu.dimension_semantics<arbitrary>], iteration_bounds = array<i64: 1>, scalar_prefetch = 0 : i64, scratch_operands = 1 : i64, tpu.core_type = #tpu.core_type<tc>, window_params = [{transform_indices = @transform_0, window_bounds = array<i64: 8, 128>}, {transform_indices = @transform_1, window_bounds = array<i64: 8, 128>}, {transform_indices = @transform_2, window_bounds = array<i64: 1, 1>}]} {
    %c0_i32 = arith.constant 0 : i32
    %0 = arith.cmpi eq, %arg0, %c0_i32 : i32
    %1 = arith.extui %0 : i1 to i32
    %c0_i32_0 = arith.constant 0 : i32
    %2 = arith.cmpi ne, %1, %c0_i32_0 : i32
    scf.if %2 {
      %cst_13 = arith.constant 0.000000e+00 : f32
      %21 = vector.broadcast %cst_13 : f32 to vector<8x128xf32>
      %c0_14 = arith.constant 0 : index
      %c0_15 = arith.constant 0 : index
      %22 = vector.load %arg4[%c0_14, %c0_15] : memref<8x128xf32, #tpu.memory_space<vmem>>, vector<8x128xf32>
      tpu.vector_store %arg4[%c0_14, %c0_15], %21 {strides = array<i32>} : memref<8x128xf32, #tpu.memory_space<vmem>>, vector<8x128xf32>,
    } else {
    }
    %c0 = arith.constant 0 : index
    %c0_1 = arith.constant 0 : index
    %3 = vector.load %arg1[%c0, %c0_1] : memref<8x128xf32, #tpu.memory_space<vmem>>, vector<8x128xf32>
    %cst = arith.constant -1.000000e+01 : f32
    %cst_2 = arith.constant 1.000000e+01 : f32
    %4 = vector.broadcast %cst : f32 to vector<8x128xf32>
    %5 = arith.maximumf %4, %3 : vector<8x128xf32>
    %6 = vector.broadcast %cst_2 : f32 to vector<8x128xf32>
    %7 = arith.minimumf %6, %5 : vector<8x128xf32>
    %c0_3 = arith.constant 0 : index
    %c0_4 = arith.constant 0 : index
    %8 = vector.load %arg2[%c0_3, %c0_4] : memref<8x128xf32, #tpu.memory_space<vmem>>, vector<8x128xf32>
    %cst_5 = arith.constant -1.000000e+01 : f32
    %cst_6 = arith.constant 1.000000e+01 : f32
    %9 = vector.broadcast %cst_5 : f32 to vector<8x128xf32>
    %10 = arith.maximumf %9, %8 : vector<8x128xf32>
    %11 = vector.broadcast %cst_6 : f32 to vector<8x128xf32>
    %12 = arith.minimumf %11, %10 : vector<8x128xf32>
    %13 = arith.subf %7, %12 : vector<8x128xf32>
    %14 = arith.mulf %13, %13 : vector<8x128xf32>
    %c0_7 = arith.constant 0 : index
    %c0_8 = arith.constant 0 : index
    %15 = vector.load %arg4[%c0_7, %c0_8] : memref<8x128xf32, #tpu.memory_space<vmem>>, vector<8x128xf32>
    %16 = arith.addf %15, %14 : vector<8x128xf32>
    %c0_9 = arith.constant 0 : index
    %c0_10 = arith.constant 0 : index
    %17 = vector.load %arg4[%c0_9, %c0_10] : memref<8x128xf32, #tpu.memory_space<vmem>>, vector<8x128xf32>
    tpu.vector_store %arg4[%c0_9, %c0_10], %16 {strides = array<i32>} : memref<8x128xf32, #tpu.memory_space<vmem>>, vector<8x128xf32>,
    %c0_i32_11 = arith.constant 0 : i32
    %18 = arith.cmpi eq, %arg0, %c0_i32_11 : i32
    %19 = arith.extui %18 : i1 to i32
    %c0_i32_12 = arith.constant 0 : i32
    %20 = arith.cmpi ne, %19, %c0_i32_12 : i32
    scf.if %20 {
      %c0_13 = arith.constant 0 : index
      %c0_14 = arith.constant 0 : index
      %21 = vector.load %arg4[%c0_13, %c0_14] : memref<8x128xf32, #tpu.memory_space<vmem>>, vector<8x128xf32>
      %22 = vector.shape_cast %21 : vector<8x128xf32> to vector<1x8x128xf32>
      %cst_15 = arith.constant dense<0.000000e+00> : vector<1xf32>
      %23 = vector.multi_reduction <add>, %22, %cst_15 [1, 2] : vector<1x8x128xf32> to vector<1xf32>
      %24 = vector.shape_cast %23 : vector<1xf32> to vector<1x1x1xf32>
      %25 = vector.extract %24[0, 0, 0] : f32 from vector<1x1x1xf32>
      %cst_16 = arith.constant 9.765625E-4 : f32
      %26 = arith.mulf %25, %cst_16 : f32
      %c0_17 = arith.constant 0 : index
      %c0_18 = arith.constant 0 : index
      %27 = memref.load %arg3[%c0_17, %c0_18] : memref<1x1xf32, #tpu.memory_space<smem>>
      memref.store %26, %arg3[%c0_17, %c0_18] : memref<1x1xf32, #tpu.memory_space<smem>>
    } else {
    }
    return
  }
  func.func @transform_0(%arg0: i32) -> (i32, i32) {
    %c0_i32 = arith.constant 0 : i32
    %c0_i32_0 = arith.constant 0 : i32
    return %arg0, %c0_i32 : i32, i32
  }
  func.func @transform_1(%arg0: i32) -> (i32, i32) {
    %c0_i32 = arith.constant 0 : i32
    %c0_i32_0 = arith.constant 0 : i32
    return %arg0, %c0_i32 : i32, i32
  }
  func.func @transform_2(%arg0: i32) -> (i32, i32) {
    %c0_i32 = arith.constant 0 : i32
    %c0_i32_0 = arith.constant 0 : i32
    %c0_i32_1 = arith.constant 0 : i32
    return %c0_i32, %c0_i32_0 : i32, i32
  }
}

</mosaic_0001>

<bundles_post_ra>
// kernel: tpu_custom_call.1
= control target key start
LH: loop header
LB: loop body
LE: loop exit
PB: predicated region body
PF: predicated region fallthrough
CT: control target
= control target key end

     0   :  { %7 = vsyncpa [#allocation4], 0  ;;  %s189_s0 = inlined_call_operand.hbm [shape: f32[8,128], index: 0, kind: input, shape index: {}]   ;;  %s190_s1 = inlined_call_operand.hbm [shape: f32[8,128], index: 1, kind: input, shape index: {}]   ;;  %s191_s2 = inlined_call_operand.hbm [shape: f32[1,1], index: 2, kind: output, shape index: {}]  }
   0x1   :  { %8 = vsyncpa [#allocation7], 0 }
   0x2   :  { %9 = vsyncpa [#allocation5], 0  ;;  %s15_s11 = sshll.u32 %s189_s0, 4  ;;  %s162_s12 = smov [#allocation3]   ;;  %s16_s11 = int_to_ptr.hbm [resolvable:$true] %s15_s11 }
   0x3   :  { %s17_s13 = sshll.u32 %s162_s12, 4  ;;  %s26_s16 = sshll.u32 %s190_s1, 4  ;;  %s18_s13 = int_to_ptr.vmem [resolvable:$true] %s17_s13  ;;  %s27_s16 = int_to_ptr.hbm [resolvable:$true] %s26_s16 }
   0x4   :  { %20 = dma.hbm_to_vmem [thread:$0]  %s16_s11, 128, %s18_s13, [#allocation4]  }
   0x5   :  { %s163_s17 = smov [#allocation6]  }
   0x6   :  { %s28_s18 = sshll.u32 %s163_s17, 4  ;;  %s29_s18 = int_to_ptr.vmem [resolvable:$true] %s28_s18 }
   0x7   :  { %31 = dma.hbm_to_vmem [thread:$0]  %s27_s16, 128, %s29_s18, [#allocation7]  }
   0x8   :  { %156 = dma.done.wait [#allocation4], 128  }
   0x9   :  { %157 = vsyncadd [#allocation4], 4294967168 }
   0xa   :  { %158 = dma.done.wait [#allocation7], 128  }
   0xb   :  { %159 = vsyncadd [#allocation7], 4294967168  ;;  %v45_v0 = vld [vmem:[#allocation3] sm:$0xff]  ;;  %v48_v1 = vld [vmem:[#allocation6] sm:$0xff]  ;;  %s77_s19 = sshll.u32 %s191_s2, 4  ;;  %s164_s22 = smov [#allocation8]   ;;  %s78_s19 = int_to_ptr.hbm [resolvable:$true] %s77_s19 }
   0xc   :  { %v89_v2 = vclamps-f32 %v45_v0, 10.0  ;;  %v90_v3 = vclamps-f32 %v48_v1, 10.0 }
   0xe   :  { %v51_v4 = vsub.f32 %v89_v2, %v90_v3 }
  0x10   :  { %v52_v5 = vmul.f32 %v51_v4, %v51_v4 }
  0x12   :  { %60 = vadd.xlane.f32.xlu0 %v52_v5 }
  0x85   :  { %v61_v6 = vpop.xlane.xlu0 %60 }
  0x86   :  { %v62_v7 = vrot.slane %v61_v6, 4 }
  0x88   :  { %v63_v8 = vadd.f32 %v62_v7, %v61_v6 }
  0x8a   :  { %v64_v9 = vrot.slane %v63_v8, 2 }
  0x8c   :  { %v65_v10 = vadd.f32 %v64_v9, %v63_v8 }
  0x8e   :  { %v66_v11 = vrot.slane %v65_v10, 1 }
  0x90   :  { %v67_v12 = vadd.f32 %v66_v11, %v65_v10 }
  0x92   :  { %91 = vpush %v67_v12 }
  0xc3   :  { %s92_s20 = spop %91 }
  0xc4   :  { %s69_s21 = smul.f32 0.0009765625, %s92_s20 }
  0xc6   :  { %71 = sst [smem:[#allocation8]] %s69_s21 }
  0xc7   :  { %80 = dma.smem_to_hbm %s164_s22, 16, %s78_s19, [#allocation5]  }
  0xc8   :  { %160 = dma.done.wait [#allocation5], 16  }
  0xc9   :  { %161 = vsyncadd [#allocation5], 4294967280 }
  0xca   :  { %85 = sfence }
  0xcb   :  { %86 = vsyncpa [#allocation4], 1 }
  0xcc   :  { %87 = vsyncpa [#allocation7], 1 }
  0xcd   :  { %88 = vsyncpa [#allocation5], 1 }

</bundles_post_ra>
